<compile_context>
chip_gen: v7x
topology: tpu7x:2x2x1
jax: 0.10.0
libtpu: 0.0.40
codegen_flags: <defaults>
</compile_context>

<pallas_src>
import functools

import jax
import jax.numpy as jnp
from jax.experimental import pallas as pl
from jax.experimental.pallas import tpu as pltpu

LANES = 128


def _round_up(v, m):
    return ((v + m - 1) // m) * m


def _tensorcores_per_chip():
    """Best-effort trace-time TensorCore count (1 on v5e/v6e, 2 on v7x/megacore)."""
    try:
        info = pltpu.get_tpu_info()
        for name in ("num_cores", "num_tensorcores", "tensorcore_count",
                     "cores_per_chip", "tensorcores_per_chip"):
            v = getattr(info, name, None)
            if isinstance(v, int) and v >= 1:
                return v
    except Exception:
        pass
    try:
        kind = jax.devices()[0].device_kind.lower()
        if ("v7" in kind) or ("v4" in kind) or ("v5p" in kind):
            return 2
    except Exception:
        pass
    return 1


def _dice_partial_kernel(x_ref, t_ref, acc_xt_ref, acc_s_ref, *,
                         total_rows, tile_rows, need_mask):
    """Grid = (core_split, row_tile).  Axis 1 is the reduction ("arbitrary").

    acc_xt_ref / acc_s_ref are (8, 128) output blocks, one pair per core split,
    resident in VMEM across the reduction axis:
      acc_xt = per-(sublane,lane) partial sums of x * t
      acc_s  = per-(sublane,lane) partial sums of x + t
    """
    c = pl.program_id(0)
    i = pl.program_id(1)

    @pl.when(i == 0)
    def _():
        acc_xt_ref[...] = jnp.zeros_like(acc_xt_ref)
        acc_s_ref[...] = jnp.zeros_like(acc_s_ref)

    def accumulate(mask_rows):
        # Cast in-kernel (VPU has slack); inputs stay in native dtype in HBM.
        x = x_ref[...].astype(jnp.float32)
        t = t_ref[...].astype(jnp.float32)
        if mask_rows:
            # Zero rows past the logical end of the flattened data: covers both
            # the undefined tail of a partially out-of-bounds block and fully
            # out-of-range (clamped, duplicate) tiles on the last core split.
            row_base = (c * pl.num_programs(1) + i) * tile_rows
            row_ids = jax.lax.broadcasted_iota(jnp.int32, x.shape, 0) + row_base
            valid = row_ids < total_rows
            x = jnp.where(valid, x, 0.0)
            t = jnp.where(valid, t, 0.0)
        # Fold the tile into vreg-shaped partials with pure VPU adds (no XLU).
        xt = (x * t).reshape(tile_rows // 8, 8, LANES)
        s = (x + t).reshape(tile_rows // 8, 8, LANES)
        acc_xt_ref[...] += jnp.sum(xt, axis=0)
        acc_s_ref[...] += jnp.sum(s, axis=0)

    if not need_mask:
        accumulate(False)
    else:
        # Only the tile that straddles (or lies entirely past) the logical end
        # pays for the mask; interior tiles take the pure multiply/add path.
        row_base = (c * pl.num_programs(1) + i) * tile_rows
        straddles = row_base + tile_rows > total_rows

        @pl.when(jnp.logical_not(straddles))
        def _():
            accumulate(False)

        @pl.when(straddles)
        def _():
            accumulate(True)


def dice_loss(inputs, targets, smooth=1.0, *, tile_rows=8192):
    """Pallas implementation of DiceLoss.forward(inputs, targets, smooth)."""
    x = inputs.reshape(-1)
    t = targets.reshape(-1)
    n = x.shape[0]

    # Lane-aligned prefix feeds the kernel (zero-copy reshape when n % 128 == 0,
    # the common case); the <128-element ragged tail is reduced in plain JAX so
    # there is never a full-array pad/copy in HBM.
    n_aligned = (n // LANES) * LANES
    tail_xt = jnp.float32(0.0)
    tail_s = jnp.float32(0.0)
    if n_aligned < n:
        x_tail = x[n_aligned:].astype(jnp.float32)
        t_tail = t[n_aligned:].astype(jnp.float32)
        tail_xt = jnp.sum(x_tail * t_tail)
        tail_s = jnp.sum(x_tail) + jnp.sum(t_tail)

    smooth = jnp.asarray(smooth, jnp.float32)

    if n_aligned == 0:
        # Fewer than 128 elements: not worth a kernel launch.
        dice = (2.0 * tail_xt + smooth) / (tail_s + smooth)
        return 1.0 - dice

    rows = n_aligned // LANES
    x2 = (x if n_aligned == n else x[:n_aligned]).reshape(rows, LANES)
    t2 = (t if n_aligned == n else t[:n_aligned]).reshape(rows, LANES)

    # Tile sizing: ~4 MiB f32 per input block by default; clamp to the data size
    # and round to the packed-tile sublane multiple of the narrowest dtype
    # (8 rows f32, 16 bf16, 32 int8) so input DMAs stay on native tiles.
    packing = max(4 // x2.dtype.itemsize, 4 // t2.dtype.itemsize, 1)
    row_mult = 8 * packing
    tile_rows = max(row_mult,
                    _round_up(min(tile_rows, _round_up(rows, row_mult)), row_mult))
    num_tiles = pl.cdiv(rows, tile_rows)

    # Shard the row-tile range across the chip's TensorCores (2 on v7x); on
    # single-TC v5e/v6e splits=1, avoiding the duplicate clamped-tile read and
    # the always-on mask for tile-aligned inputs.
    # TODO(synk): on v7x, verify with a trace that "parallel" shards axis 0
    # across both TensorCores; switch to pltpu.CORE_PARALLEL if it does not.
    splits = _tensorcores_per_chip()
    splits = splits if num_tiles >= splits else 1
    steps = pl.cdiv(num_tiles, splits)
    need_mask = splits * steps * tile_rows > rows

    def row_block(c, i):
        # Clamp so a fully out-of-range tile re-reads the last valid tile; its
        # contribution is zeroed by the in-kernel row mask.
        return (jnp.minimum(c * steps + i, num_tiles - 1), 0)

    acc_spec = pl.BlockSpec((8, LANES), lambda c, i: (c, 0))

    # Double-buffered inputs must fit comfortably in scoped VMEM; cap at 48 MiB
    # so the same tiling stays safe on v7x's 64 MiB physical VMEM.
    block_bytes = tile_rows * LANES * (x2.dtype.itemsize + t2.dtype.itemsize)
    vmem_limit = int(min(48 * 1024 * 1024,
                         max(32 * 1024 * 1024, 2 * block_bytes + (2 << 20))))

    xt_part, s_part = pl.pallas_call(
        functools.partial(_dice_partial_kernel, total_rows=rows,
                          tile_rows=tile_rows, need_mask=need_mask),
        out_shape=(jax.ShapeDtypeStruct((splits * 8, LANES), jnp.float32),
                   jax.ShapeDtypeStruct((splits * 8, LANES), jnp.float32)),
        grid_spec=pltpu.PrefetchScalarGridSpec(
            num_scalar_prefetch=0,
            grid=(splits, steps),
            in_specs=[pl.BlockSpec((tile_rows, LANES), row_block),
                      pl.BlockSpec((tile_rows, LANES), row_block)],
            out_specs=[acc_spec, acc_spec],
        ),
        compiler_params=pltpu.CompilerParams(
            dimension_semantics=("parallel", "arbitrary"),
            vmem_limit_bytes=vmem_limit,
        ),
    )(x2, t2)

    # Tiny final reduction + dice formula in plain JAX (keeps `smooth` traced,
    # no recompile per value).
    intersection = jnp.sum(xt_part) + tail_xt
    total = jnp.sum(s_part) + tail_s
    dice = (2.0 * intersection + smooth) / (total + smooth)
    return 1.0 - dice


def dice_loss_ref(inputs, targets, smooth=1.0):
    x = inputs.reshape(-1).astype(jnp.float32)
    t = targets.reshape(-1).astype(jnp.float32)
    intersection = jnp.sum(x * t)
    dice = (2.0 * intersection + smooth) / (jnp.sum(x) + jnp.sum(t) + smooth)
    return 1.0 - dice


if __name__ == "__main__":
    key = jax.random.PRNGKey(0)
    k1, k2, k3, k4 = jax.random.split(key, 4)

    # Case 1: NCHW post-sigmoid probs + binary float targets (lane-aligned size;
    # exercises the zero-copy, unmasked path).
    inputs = jax.nn.sigmoid(jax.random.normal(k1, (2, 4, 16, 16), jnp.float32))
    targets = (jax.random.uniform(k2, (2, 4, 16, 16)) > 0.5).astype(jnp.float32)
    loss = jax.block_until_ready(dice_loss(inputs, targets, smooth=1.0))
    ref = jax.block_until_ready(dice_loss_ref(inputs, targets, smooth=1.0))
    assert jnp.allclose(loss, ref, rtol=1e-5, atol=1e-5), (loss, ref)

    # Case 2: bf16 inputs, odd element count (exercises the native-dtype path,
    # the packed-tile rounding, the ragged JAX tail, and the gated mask).
    inputs2 = jax.nn.sigmoid(jax.random.normal(k3, (3, 5, 7, 11), jnp.bfloat16))
    targets2 = (jax.random.uniform(k4, (3, 5, 7, 11)) > 0.5).astype(jnp.float32)
    loss2 = jax.block_until_ready(dice_loss(inputs2, targets2, smooth=1.0))
    ref2 = jax.block_until_ready(dice_loss_ref(inputs2, targets2, smooth=1.0))
    assert jnp.allclose(loss2, ref2, rtol=1e-4, atol=1e-4), (loss2, ref2)

    print("KERNEL_OK")
</pallas_src>

<mosaic_0001>
module attributes {stable_mosaic.version = 11 : i64} {
  func.func @_dice_partial_kernel(%arg0: i32, %arg1: i32, %arg2: memref<16x128xf32, #tpu.memory_space<vmem>>, %arg3: memref<16x128xf32, #tpu.memory_space<vmem>>, %arg4: memref<8x128xf32, #tpu.memory_space<vmem>>, %arg5: memref<8x128xf32, #tpu.memory_space<vmem>>) attributes {dimension_semantics = [#tpu.dimension_semantics<parallel>, #tpu.dimension_semantics<arbitrary>], iteration_bounds = array<i64: 1, 1>, scalar_prefetch = 0 : i64, scratch_operands = 0 : i64, tpu.core_type = #tpu.core_type<tc>, window_params = [{transform_indices = @transform_0, window_bounds = array<i64: 16, 128>}, {transform_indices = @transform_1, window_bounds = array<i64: 16, 128>}, {transform_indices = @transform_2, window_bounds = array<i64: 8, 128>}, {transform_indices = @transform_3, window_bounds = array<i64: 8, 128>}]} {
    %c0_i32 = arith.constant 0 : i32
    %0 = arith.cmpi eq, %arg1, %c0_i32 : i32
    %1 = arith.extui %0 : i1 to i32
    %c0_i32_0 = arith.constant 0 : i32
    %2 = arith.cmpi ne, %1, %c0_i32_0 : i32
    scf.if %2 {
      %cst_13 = arith.constant 0.000000e+00 : f32
      %17 = vector.broadcast %cst_13 : f32 to vector<8x128xf32>
      %c0_14 = arith.constant 0 : index
      %c0_15 = arith.constant 0 : index
      %18 = vector.load %arg4[%c0_14, %c0_15] : memref<8x128xf32, #tpu.memory_space<vmem>>, vector<8x128xf32>
      tpu.vector_store %arg4[%c0_14, %c0_15], %17 {strides = array<i32>} : memref<8x128xf32, #tpu.memory_space<vmem>>, vector<8x128xf32>,
      %cst_16 = arith.constant 0.000000e+00 : f32
      %19 = vector.broadcast %cst_16 : f32 to vector<8x128xf32>
      %c0_17 = arith.constant 0 : index
      %c0_18 = arith.constant 0 : index
      %20 = vector.load %arg5[%c0_17, %c0_18] : memref<8x128xf32, #tpu.memory_space<vmem>>, vector<8x128xf32>
      tpu.vector_store %arg5[%c0_17, %c0_18], %19 {strides = array<i32>} : memref<8x128xf32, #tpu.memory_space<vmem>>, vector<8x128xf32>,
    } else {
    }
    %c0 = arith.constant 0 : index
    %c0_1 = arith.constant 0 : index
    %3 = vector.load %arg2[%c0, %c0_1] : memref<16x128xf32, #tpu.memory_space<vmem>>, vector<16x128xf32>
    %c0_2 = arith.constant 0 : index
    %c0_3 = arith.constant 0 : index
    %4 = vector.load %arg3[%c0_2, %c0_3] : memref<16x128xf32, #tpu.memory_space<vmem>>, vector<16x128xf32>
    %5 = arith.mulf %3, %4 : vector<16x128xf32>
    %6 = vector.shape_cast %5 : vector<16x128xf32> to vector<2x8x128xf32>
    %7 = arith.addf %3, %4 : vector<16x128xf32>
    %8 = vector.shape_cast %7 : vector<16x128xf32> to vector<2x8x128xf32>
    %c0_4 = arith.constant 0 : index
    %c0_5 = arith.constant 0 : index
    %9 = vector.load %arg4[%c0_4, %c0_5] : memref<8x128xf32, #tpu.memory_space<vmem>>, vector<8x128xf32>
    %cst = arith.constant dense<0.000000e+00> : vector<8x128xf32>
    %10 = vector.multi_reduction <add>, %6, %cst [0] : vector<2x8x128xf32> to vector<8x128xf32>
    %11 = arith.addf %9, %10 : vector<8x128xf32>
    %c0_6 = arith.constant 0 : index
    %c0_7 = arith.constant 0 : index
    %12 = vector.load %arg4[%c0_6, %c0_7] : memref<8x128xf32, #tpu.memory_space<vmem>>, vector<8x128xf32>
    tpu.vector_store %arg4[%c0_6, %c0_7], %11 {strides = array<i32>} : memref<8x128xf32, #tpu.memory_space<vmem>>, vector<8x128xf32>,
    %c0_8 = arith.constant 0 : index
    %c0_9 = arith.constant 0 : index
    %13 = vector.load %arg5[%c0_8, %c0_9] : memref<8x128xf32, #tpu.memory_space<vmem>>, vector<8x128xf32>
    %cst_10 = arith.constant dense<0.000000e+00> : vector<8x128xf32>
    %14 = vector.multi_reduction <add>, %8, %cst_10 [0] : vector<2x8x128xf32> to vector<8x128xf32>
    %15 = arith.addf %13, %14 : vector<8x128xf32>
    %c0_11 = arith.constant 0 : index
    %c0_12 = arith.constant 0 : index
    %16 = vector.load %arg5[%c0_11, %c0_12] : memref<8x128xf32, #tpu.memory_space<vmem>>, vector<8x128xf32>
    tpu.vector_store %arg5[%c0_11, %c0_12], %15 {strides = array<i32>} : memref<8x128xf32, #tpu.memory_space<vmem>>, vector<8x128xf32>,
    return
  }
  func.func @transform_0(%arg0: i32, %arg1: i32) -> (i32, i32) {
    %c1_i32 = arith.constant 1 : i32
    %0 = arith.muli %arg0, %c1_i32 : i32
    %1 = arith.addi %0, %arg1 : i32
    %c0_i32 = arith.constant 0 : i32
    %2 = arith.minsi %1, %c0_i32 : i32
    %c0_i32_0 = arith.constant 0 : i32
    %c0_i32_1 = arith.constant 0 : i32
    return %2, %c0_i32_0 : i32, i32
  }
  func.func @transform_1(%arg0: i32, %arg1: i32) -> (i32, i32) {
    %c1_i32 = arith.constant 1 : i32
    %0 = arith.muli %arg0, %c1_i32 : i32
    %1 = arith.addi %0, %arg1 : i32
    %c0_i32 = arith.constant 0 : i32
    %2 = arith.minsi %1, %c0_i32 : i32
    %c0_i32_0 = arith.constant 0 : i32
    %c0_i32_1 = arith.constant 0 : i32
    return %2, %c0_i32_0 : i32, i32
  }
  func.func @transform_2(%arg0: i32, %arg1: i32) -> (i32, i32) {
    %c0_i32 = arith.constant 0 : i32
    %c0_i32_0 = arith.constant 0 : i32
    return %arg0, %c0_i32 : i32, i32
  }
  func.func @transform_3(%arg0: i32, %arg1: i32) -> (i32, i32) {
    %c0_i32 = arith.constant 0 : i32
    %c0_i32_0 = arith.constant 0 : i32
    return %arg0, %c0_i32 : i32, i32
  }
}

</mosaic_0001>

<bundles_post_ra>
// kernel: tpu_custom_call.1
= control target key start
LH: loop header
LB: loop body
LE: loop exit
PB: predicated region body
PF: predicated region fallthrough
CT: control target
= control target key end

     0   :  { %9 = vsyncpa [#allocation3], 0  ;;  %s296_s0 = inlined_call_operand.hbm [shape: f32[16,128], index: 0, kind: input, shape index: {}]   ;;  %s297_s1 = inlined_call_operand.hbm [shape: f32[16,128], index: 1, kind: input, shape index: {}]   ;;  %s298_s2 = inlined_call_operand.hbm [shape: f32[8,128], index: 2, kind: output, shape index: {0}]   ;;  %s299_s3 = inlined_call_operand.hbm [shape: f32[8,128], index: 3, kind: output, shape index: {1}]  }
   0x1   :  { %10 = vsyncpa [#allocation6], 0 }
   0x2   :  { %11 = vsyncpa [#allocation4], 0 }
   0x3   :  { %12 = vsyncpa [#allocation9], 0  ;;  %s222_s12 = smov [#allocation2]   ;;  %s126_s16 = scalar_lea.hbm %s296_s0, 256 }
   0x4   :  { %s24_s13 = sshll.u32 %s222_s12, 4  ;;  %p127_p0 = scmp.ne.s32.totalorder %s296_s0, %s126_s16  ;;  %s25_s13 = int_to_ptr.vmem [resolvable:$true] %s24_s13 }
   0x5   :  { %p130_p1 = scmp.lt.u32.totalorder %s126_s16, %s296_s0 }
   0x7   :  { %p132_p2 = pnand %p130_p1, %p127_p0 }
   0x9   :  { %135 = shalt.err (!%p132_p2)
}
   0xa   :  { %s136_s21 = scalar_lea.vmem %s25_s13, 256  ;;  %p141_p4 = scmp.lt.s32.totalorder %s25_s13, %s25_s13 }
   0xb   :  { %p137_p3 = scmp.ne.s32.totalorder %s25_s13, %s136_s21  ;;  %p142_p5 = scmp.lt.s32.totalorder %s136_s21, %s136_s21 }
   0xd   :  { %p143_p6 = por %p142_p5, %p141_p4 }
   0xf   :  { %p144_p7 = pnand %p143_p6, %p137_p3 }
  0x11   :  { %147 = shalt.err (!%p144_p7)
}
  0x12   :  { %s223_s22 = smov 128   ;;  %s224_s23 = smov 8  }
  0x13   :  { %30 = dma.hbm_to_vmem [thread:$0]  %s296_s0, 256, %s25_s13, [#allocation3], %s223_s22, %s223_s22, %s224_s23  }
  0x14   :  { %s225_s26 = smov [#allocation5]   ;;  %s148_s30 = scalar_lea.hbm %s297_s1, 256 }
  0x15   :  { %s42_s27 = sshll.u32 %s225_s26, 4  ;;  %p149_p8 = scmp.ne.s32.totalorder %s297_s1, %s148_s30  ;;  %s43_s27 = int_to_ptr.vmem [resolvable:$true] %s42_s27 }
  0x16   :  { %p152_p9 = scmp.lt.u32.totalorder %s148_s30, %s297_s1 }
  0x18   :  { %p154_p10 = pnand %p152_p9, %p149_p8 }
  0x1a   :  { %157 = shalt.err (!%p154_p10)
}
  0x1b   :  { %s158_s8 = scalar_lea.vmem %s43_s27, 256  ;;  %p163_p12 = scmp.lt.s32.totalorder %s43_s27, %s43_s27 }
  0x1c   :  { %p159_p11 = scmp.ne.s32.totalorder %s43_s27, %s158_s8  ;;  %p164_p13 = scmp.lt.s32.totalorder %s158_s8, %s158_s8 }
  0x1e   :  { %p165_p0 = por %p164_p13, %p163_p12 }
  0x20   :  { %p166_p1 = pnand %p165_p0, %p159_p11 }
  0x22   :  { %169 = shalt.err (!%p166_p1)
}
  0x23   :  { %48 = dma.hbm_to_vmem [thread:$0]  %s297_s1, 256, %s43_s27, [#allocation6], %s223_s22, %s223_s22, %s224_s23  }
  0x24   :  { %214 = dma.done.wait [#allocation3], 256  }
  0x25   :  { %215 = vsyncadd [#allocation3], 4294967040 }
  0x26   :  { %216 = dma.done.wait [#allocation6], 256  }
  0x27   :  { %217 = vsyncadd [#allocation6], 4294967040  ;;  %v69_v0 = vld [vmem:[#allocation2] sm:$0xff]  ;;  %v70_v1 = vld [vmem:[#allocation2 + $0x8] sm:$0xff]  ;;  %s226_s10 = smov [#allocation7]   ;;  %s227_s12 = smov [#allocation8]  }
  0x28   :  { %v71_v2 = vld [vmem:[#allocation5] sm:$0xff]  ;;  %v72_v3 = vld [vmem:[#allocation5 + $0x8] sm:$0xff]  ;;  %s91_s11 = sshll.u32 %s226_s10, 4  ;;  %s101_s13 = sshll.u32 %s227_s12, 4  ;;  %s92_s11 = int_to_ptr.vmem [resolvable:$true] %s91_s11  ;;  %s102_s13 = int_to_ptr.vmem [resolvable:$true] %s101_s13 }
  0x29   :  { %v73_v4 = vmul.f32 %v71_v2, %v69_v0  ;;  %v75_v5 = vadd.f32 %v71_v2, %v69_v0  ;;  %v74_v6 = vmul.f32 %v72_v3, %v70_v1  ;;  %v76_v7 = vadd.f32 %v72_v3, %v70_v1  ;;  %s170_s1 = scalar_lea.vmem %s92_s11, 128  ;;  %p175_p3 = scmp.lt.s32.totalorder %s92_s11, %s92_s11 }
  0x2a   :  { %p171_p2 = scmp.ne.s32.totalorder %s92_s11, %s170_s1  ;;  %p176_p4 = scmp.lt.s32.totalorder %s170_s1, %s170_s1 }
  0x2b   :  { %v78_v8 = vadd.f32 %v74_v6, %v73_v4  ;;  %v82_v9 = vadd.f32 %v76_v7, %v75_v5 }
  0x2c   :  { %p177_p5 = por %p176_p4, %p175_p3 }
  0x2d   :  { %80 = vst [vmem:[#allocation7] sm:$0xff] %v78_v8  ;;  %84 = vst [vmem:[#allocation8] sm:$0xff] %v82_v9 }
  0x2e   :  { %p178_p6 = pnand %p177_p5, %p171_p2 }
  0x30   :  { %181 = shalt.err (!%p178_p6)
}
  0x31   :  { %s182_s16 = scalar_lea.hbm %s298_s2, 128 }
  0x32   :  { %p183_p7 = scmp.ne.s32.totalorder %s298_s2, %s182_s16  ;;  %p186_p8 = scmp.lt.u32.totalorder %s182_s16, %s298_s2 }
  0x34   :  { %p188_p9 = pnand %p186_p8, %p183_p7 }
  0x36   :  { %191 = shalt.err (!%p188_p9)
}
  0x37   :  { %94 = dma.vmem_to_hbm [thread:$0]  %s92_s11, 128, %s298_s2, [#allocation4]  }
  0x38   :  { %s192_s23 = scalar_lea.vmem %s102_s13, 128  ;;  %p197_p11 = scmp.lt.s32.totalorder %s102_s13, %s102_s13 }
  0x39   :  { %p193_p10 = scmp.ne.s32.totalorder %s102_s13, %s192_s23  ;;  %p198_p12 = scmp.lt.s32.totalorder %s192_s23, %s192_s23 }
  0x3b   :  { %p199_p13 = por %p198_p12, %p197_p11 }
  0x3d   :  { %p200_p0 = pnand %p199_p13, %p193_p10 }
  0x3f   :  { %203 = shalt.err (!%p200_p0)
}
  0x40   :  { %s204_s26 = scalar_lea.hbm %s299_s3, 128 }
  0x41   :  { %p205_p1 = scmp.ne.s32.totalorder %s299_s3, %s204_s26  ;;  %p208_p2 = scmp.lt.u32.totalorder %s204_s26, %s299_s3 }
  0x43   :  { %p210_p3 = pnand %p208_p2, %p205_p1 }
  0x45   :  { %213 = shalt.err (!%p210_p3)
}
  0x46   :  { %104 = dma.vmem_to_hbm [thread:$0]  %s102_s13, 128, %s299_s3, [#allocation9]  }
  0x47   :  { %218 = dma.done.wait [#allocation4], 128  }
  0x48   :  { %219 = vsyncadd [#allocation4], 4294967168 }
  0x49   :  { %220 = dma.done.wait [#allocation9], 128  }
  0x4a   :  { %221 = vsyncadd [#allocation9], 4294967168 }
  0x4b   :  { %111 = vsyncpa [#allocation3], 1 }
  0x4c   :  { %112 = vsyncpa [#allocation6], 1 }
  0x4d   :  { %113 = vsyncpa [#allocation4], 1 }
  0x4e   :  { %114 = vsyncpa [#allocation9], 1 }

</bundles_post_ra>
